<compile_context>
chip_gen: v7x
topology: tpu7x:2x2x1
jax: 0.10.0
libtpu: 0.0.40
codegen_flags: <defaults>
</compile_context>

<pallas_src>
import jax
import jax.numpy as jnp
from jax.experimental import pallas as pl
from jax.experimental.pallas import tpu as pltpu


# ----------------------------- Pallas kernel ---------------------------------

def lstm_cell_kernel(vec_ref, ctx_ref, c_ref, h_ref,
                     wv_ref, wc_ref, wh_ref, b_ref,
                     nc_ref, nh_ref):
    # Fused gate pre-activations for all 4 gates: (B_TILE, 4*out_dim)
    pre = (
        jnp.dot(vec_ref[...], wv_ref[...], preferred_element_type=jnp.float32)
        + jnp.dot(ctx_ref[...], wc_ref[...], preferred_element_type=jnp.float32)
        + jnp.dot(h_ref[...], wh_ref[...], preferred_element_type=jnp.float32)
        + b_ref[...]
    )
    g = jnp.maximum(pre, 0.0)                       # sigma = relu
    d = nc_ref.shape[-1]
    gf = g[:, 0 * d:1 * d]
    gd = g[:, 1 * d:2 * d]
    gi = g[:, 2 * d:3 * d]
    go = g[:, 3 * d:4 * d]
    nc = c_ref[...].astype(jnp.float32) * gf + gd * gi
    nh = jnp.tanh(nc) * go                          # ac = tanh
    nc_ref[...] = nc.astype(nc_ref.dtype)
    nh_ref[...] = nh.astype(nh_ref.dtype)


def lstm_forward(vec, ctx, c_state, h_state, fused, *, b_tile=None):
    """fused = dict(wv, wc, wh, b); wv/wc/wh: (in_dim, 4*out_dim), b: (1, 4*out_dim)."""
    B, in_dim = vec.shape
    out_dim = c_state.shape[-1]
    wv, wc, wh, b = fused["wv"], fused["wc"], fused["wh"], fused["b"]
    assert wv.shape == (in_dim, 4 * out_dim)
    assert h_state.shape == (B, in_dim)   # module applies Linear(in_dim, out_dim) to h_state

    if b_tile is None:
        b_tile = B if B <= 128 else 128
    assert b_tile == B or b_tile % 8 == 0, "batch tile must be sublane-aligned"
    grid = (pl.cdiv(B, b_tile),)

    def batched(width):
        return pl.BlockSpec((b_tile, width), lambda i: (i, 0))

    def full(a):
        return pl.BlockSpec(a.shape, lambda i: (0, 0))

    nc, nh = pl.pallas_call(
        lstm_cell_kernel,
        out_shape=(
            jax.ShapeDtypeStruct((B, out_dim), jnp.float32),
            jax.ShapeDtypeStruct((B, out_dim), jnp.float32),
        ),
        grid=grid,
        in_specs=[
            batched(in_dim),           # vec
            batched(in_dim),           # ctx
            batched(out_dim),          # c_state
            batched(in_dim),           # h_state
            full(wv), full(wc), full(wh), full(b),
        ],
        out_specs=(batched(out_dim), batched(out_dim)),
        compiler_params=pltpu.CompilerParams(
            dimension_semantics=("parallel",),
        ),
    )(vec, ctx, c_state, h_state, wv, wc, wh, b)
    return nc, nh


# ------------------------- Parameters & reference ----------------------------

_GATES = ("f", "d", "i", "o")
_STREAMS = ("v", "c", "h")


def init_params(key, in_dim, out_dim):
    """12 PyTorch-style Linear(in_dim, out_dim) layers: weight (out,in), bias (out,)."""
    bound = 1.0 / (in_dim ** 0.5)
    params = {}
    keys = jax.random.split(key, 2 * len(_GATES) * len(_STREAMS))
    idx = 0
    for g in _GATES:
        for s in _STREAMS:
            params[g + s] = {
                "w": jax.random.uniform(keys[idx], (out_dim, in_dim), jnp.float32,
                                        -bound, bound),
                "b": jax.random.uniform(keys[idx + 1], (out_dim,), jnp.float32,
                                        -bound, bound),
            }
            idx += 2
    return params


def fuse_params(params):
    """Fuse the 12 linears into 3 (in_dim, 4*out_dim) matmuls + one (1, 4*out_dim) bias."""
    wv = jnp.concatenate([params[g + "v"]["w"].T for g in _GATES], axis=1)
    wc = jnp.concatenate([params[g + "c"]["w"].T for g in _GATES], axis=1)
    wh = jnp.concatenate([params[g + "h"]["w"].T for g in _GATES], axis=1)
    b = jnp.concatenate(
        [params[g + "v"]["b"] + params[g + "c"]["b"] + params[g + "h"]["b"]
         for g in _GATES], axis=0)[None, :]
    return {"wv": wv, "wc": wc, "wh": wh, "b": b}


def reference_forward(vec, ctx, c_state, h_state, params):
    """Pure-JAX mirror of the PyTorch forward (per-layer, unfused)."""
    def lin(x, p):
        return x @ p["w"].T + p["b"]

    relu = lambda x: jnp.maximum(x, 0.0)
    gf = relu(lin(vec, params["fv"]) + lin(ctx, params["fc"]) + lin(h_state, params["fh"]))
    gd = relu(lin(vec, params["dv"]) + lin(ctx, params["dc"]) + lin(h_state, params["dh"]))
    gi = relu(lin(vec, params["iv"]) + lin(ctx, params["ic"]) + lin(h_state, params["ih"]))
    go = relu(lin(vec, params["ov"]) + lin(ctx, params["oc"]) + lin(h_state, params["oh"]))
    nc = c_state * gf + gd * gi
    nh = jnp.tanh(nc) * go
    return nc, nh


# ----------------------------------- test -------------------------------------

if __name__ == "__main__":
    B, in_dim, out_dim = 256, 32, 32     # b_tile=128 -> grid of 2 (both v7x TCs busy)

    key = jax.random.PRNGKey(0)
    kv, kc, ks, kh, kp = jax.random.split(key, 5)
    vec = jax.random.normal(kv, (B, in_dim), jnp.float32)
    ctx = jax.random.normal(kc, (B, in_dim), jnp.float32)
    c_state = jax.random.normal(ks, (B, out_dim), jnp.float32)
    h_state = jax.random.normal(kh, (B, in_dim), jnp.float32)

    params = init_params(kp, in_dim, out_dim)
    fused = fuse_params(params)

    nc, nh = lstm_forward(vec, ctx, c_state, h_state, fused, b_tile=128)
    nc, nh = jax.block_until_ready((nc, nh))

    nc_ref, nh_ref = reference_forward(vec, ctx, c_state, h_state, params)
    assert nc.shape == (B, out_dim) and nh.shape == (B, out_dim), (nc.shape, nh.shape)
    assert jnp.allclose(nc, nc_ref, atol=1e-4, rtol=1e-4), float(jnp.abs(nc - nc_ref).max())
    assert jnp.allclose(nh, nh_ref, atol=1e-4, rtol=1e-4), float(jnp.abs(nh - nh_ref).max())

    print("KERNEL_OK")
</pallas_src>

<mosaic_0001>
module attributes {stable_mosaic.version = 11 : i64} {
  func.func @lstm_cell_kernel(%arg0: i32, %arg1: memref<128x32xf32, #tpu.memory_space<vmem>>, %arg2: memref<128x32xf32, #tpu.memory_space<vmem>>, %arg3: memref<128x32xf32, #tpu.memory_space<vmem>>, %arg4: memref<128x32xf32, #tpu.memory_space<vmem>>, %arg5: memref<32x128xf32, #tpu.memory_space<vmem>>, %arg6: memref<32x128xf32, #tpu.memory_space<vmem>>, %arg7: memref<32x128xf32, #tpu.memory_space<vmem>>, %arg8: memref<1x128xf32, #tpu.memory_space<vmem>>, %arg9: memref<128x32xf32, #tpu.memory_space<vmem>>, %arg10: memref<128x32xf32, #tpu.memory_space<vmem>>) attributes {dimension_semantics = [#tpu.dimension_semantics<parallel>], iteration_bounds = array<i64: 2>, scalar_prefetch = 0 : i64, scratch_operands = 0 : i64, tpu.core_type = #tpu.core_type<tc>, window_params = [{transform_indices = @transform_0, window_bounds = array<i64: 128, 32>}, {transform_indices = @transform_1, window_bounds = array<i64: 128, 32>}, {transform_indices = @transform_2, window_bounds = array<i64: 128, 32>}, {transform_indices = @transform_3, window_bounds = array<i64: 128, 32>}, {pipeline_mode = #tpu.pipeline_mode<synchronous>, transform_indices = @transform_4, window_bounds = array<i64: 32, 128>}, {pipeline_mode = #tpu.pipeline_mode<synchronous>, transform_indices = @transform_5, window_bounds = array<i64: 32, 128>}, {pipeline_mode = #tpu.pipeline_mode<synchronous>, transform_indices = @transform_6, window_bounds = array<i64: 32, 128>}, {pipeline_mode = #tpu.pipeline_mode<synchronous>, transform_indices = @transform_7, window_bounds = array<i64: 1, 128>}, {transform_indices = @transform_8, window_bounds = array<i64: 128, 32>}, {transform_indices = @transform_9, window_bounds = array<i64: 128, 32>}]} {
    %c0 = arith.constant 0 : index
    %c0_0 = arith.constant 0 : index
    %0 = vector.load %arg1[%c0, %c0_0] : memref<128x32xf32, #tpu.memory_space<vmem>>, vector<128x32xf32>
    %c0_1 = arith.constant 0 : index
    %c0_2 = arith.constant 0 : index
    %1 = vector.load %arg5[%c0_1, %c0_2] : memref<32x128xf32, #tpu.memory_space<vmem>>, vector<32x128xf32>
    %cst = arith.constant dense<0.000000e+00> : vector<128x128xf32>
    %2 = tpu.matmul %0, %1, %cst {dimension_numbers = #tpu.dot_dimension_numbers<[1], [0], [0], [1], [0, 0, 1, 1], [], []>} : vector<128x32xf32>, vector<32x128xf32>, vector<128x128xf32> -> vector<128x128xf32>
    %c0_3 = arith.constant 0 : index
    %c0_4 = arith.constant 0 : index
    %3 = vector.load %arg2[%c0_3, %c0_4] : memref<128x32xf32, #tpu.memory_space<vmem>>, vector<128x32xf32>
    %c0_5 = arith.constant 0 : index
    %c0_6 = arith.constant 0 : index
    %4 = vector.load %arg6[%c0_5, %c0_6] : memref<32x128xf32, #tpu.memory_space<vmem>>, vector<32x128xf32>
    %cst_7 = arith.constant dense<0.000000e+00> : vector<128x128xf32>
    %5 = tpu.matmul %3, %4, %cst_7 {dimension_numbers = #tpu.dot_dimension_numbers<[1], [0], [0], [1], [0, 0, 1, 1], [], []>} : vector<128x32xf32>, vector<32x128xf32>, vector<128x128xf32> -> vector<128x128xf32>
    %6 = arith.addf %2, %5 : vector<128x128xf32>
    %c0_8 = arith.constant 0 : index
    %c0_9 = arith.constant 0 : index
    %7 = vector.load %arg4[%c0_8, %c0_9] : memref<128x32xf32, #tpu.memory_space<vmem>>, vector<128x32xf32>
    %c0_10 = arith.constant 0 : index
    %c0_11 = arith.constant 0 : index
    %8 = vector.load %arg7[%c0_10, %c0_11] : memref<32x128xf32, #tpu.memory_space<vmem>>, vector<32x128xf32>
    %cst_12 = arith.constant dense<0.000000e+00> : vector<128x128xf32>
    %9 = tpu.matmul %7, %8, %cst_12 {dimension_numbers = #tpu.dot_dimension_numbers<[1], [0], [0], [1], [0, 0, 1, 1], [], []>} : vector<128x32xf32>, vector<32x128xf32>, vector<128x128xf32> -> vector<128x128xf32>
    %10 = arith.addf %6, %9 : vector<128x128xf32>
    %c0_13 = arith.constant 0 : index
    %c0_14 = arith.constant 0 : index
    %11 = vector.load %arg8[%c0_13, %c0_14] : memref<1x128xf32, #tpu.memory_space<vmem>>, vector<1x128xf32>
    %12 = vector.broadcast %11 : vector<1x128xf32> to vector<128x128xf32>
    %13 = arith.addf %10, %12 : vector<128x128xf32>
    %cst_15 = arith.constant 0.000000e+00 : f32
    %14 = vector.broadcast %cst_15 : f32 to vector<128x128xf32>
    %15 = arith.maximumf %13, %14 : vector<128x128xf32>
    %16 = vector.extract_strided_slice %15 {offsets = [0, 0], sizes = [128, 32], strides = [1, 1]} : vector<128x128xf32> to vector<128x32xf32>
    %17 = vector.extract_strided_slice %15 {offsets = [0, 32], sizes = [128, 32], strides = [1, 1]} : vector<128x128xf32> to vector<128x32xf32>
    %18 = vector.extract_strided_slice %15 {offsets = [0, 64], sizes = [128, 32], strides = [1, 1]} : vector<128x128xf32> to vector<128x32xf32>
    %19 = vector.extract_strided_slice %15 {offsets = [0, 96], sizes = [128, 32], strides = [1, 1]} : vector<128x128xf32> to vector<128x32xf32>
    %c0_16 = arith.constant 0 : index
    %c0_17 = arith.constant 0 : index
    %20 = vector.load %arg3[%c0_16, %c0_17] : memref<128x32xf32, #tpu.memory_space<vmem>>, vector<128x32xf32>
    %21 = arith.mulf %20, %16 : vector<128x32xf32>
    %22 = arith.mulf %17, %18 : vector<128x32xf32>
    %23 = arith.addf %21, %22 : vector<128x32xf32>
    %24 = math.tanh %23 : vector<128x32xf32>
    %25 = arith.mulf %24, %19 : vector<128x32xf32>
    %c0_18 = arith.constant 0 : index
    %c0_19 = arith.constant 0 : index
    %26 = vector.load %arg9[%c0_18, %c0_19] : memref<128x32xf32, #tpu.memory_space<vmem>>, vector<128x32xf32>
    tpu.vector_store %arg9[%c0_18, %c0_19], %23 {strides = array<i32>} : memref<128x32xf32, #tpu.memory_space<vmem>>, vector<128x32xf32>,
    %c0_20 = arith.constant 0 : index
    %c0_21 = arith.constant 0 : index
    %27 = vector.load %arg10[%c0_20, %c0_21] : memref<128x32xf32, #tpu.memory_space<vmem>>, vector<128x32xf32>
    tpu.vector_store %arg10[%c0_20, %c0_21], %25 {strides = array<i32>} : memref<128x32xf32, #tpu.memory_space<vmem>>, vector<128x32xf32>,
    return
  }
  func.func @transform_0(%arg0: i32) -> (i32, i32) {
    %c0_i32 = arith.constant 0 : i32
    %c0_i32_0 = arith.constant 0 : i32
    return %arg0, %c0_i32 : i32, i32
  }
  func.func @transform_1(%arg0: i32) -> (i32, i32) {
    %c0_i32 = arith.constant 0 : i32
    %c0_i32_0 = arith.constant 0 : i32
    return %arg0, %c0_i32 : i32, i32
  }
  func.func @transform_2(%arg0: i32) -> (i32, i32) {
    %c0_i32 = arith.constant 0 : i32
    %c0_i32_0 = arith.constant 0 : i32
    return %arg0, %c0_i32 : i32, i32
  }
  func.func @transform_3(%arg0: i32) -> (i32, i32) {
    %c0_i32 = arith.constant 0 : i32
    %c0_i32_0 = arith.constant 0 : i32
    return %arg0, %c0_i32 : i32, i32
  }
  func.func @transform_4(%arg0: i32) -> (i32, i32) {
    %c0_i32 = arith.constant 0 : i32
    %c0_i32_0 = arith.constant 0 : i32
    %c0_i32_1 = arith.constant 0 : i32
    return %c0_i32, %c0_i32_0 : i32, i32
  }
  func.func @transform_5(%arg0: i32) -> (i32, i32) {
    %c0_i32 = arith.constant 0 : i32
    %c0_i32_0 = arith.constant 0 : i32
    %c0_i32_1 = arith.constant 0 : i32
    return %c0_i32, %c0_i32_0 : i32, i32
  }
  func.func @transform_6(%arg0: i32) -> (i32, i32) {
    %c0_i32 = arith.constant 0 : i32
    %c0_i32_0 = arith.constant 0 : i32
    %c0_i32_1 = arith.constant 0 : i32
    return %c0_i32, %c0_i32_0 : i32, i32
  }
  func.func @transform_7(%arg0: i32) -> (i32, i32) {
    %c0_i32 = arith.constant 0 : i32
    %c0_i32_0 = arith.constant 0 : i32
    %c0_i32_1 = arith.constant 0 : i32
    return %c0_i32, %c0_i32_0 : i32, i32
  }
  func.func @transform_8(%arg0: i32) -> (i32, i32) {
    %c0_i32 = arith.constant 0 : i32
    %c0_i32_0 = arith.constant 0 : i32
    return %arg0, %c0_i32 : i32, i32
  }
  func.func @transform_9(%arg0: i32) -> (i32, i32) {
    %c0_i32 = arith.constant 0 : i32
    %c0_i32_0 = arith.constant 0 : i32
    return %arg0, %c0_i32 : i32, i32
  }
}

</mosaic_0001>

<bundles_post_ra>
// kernel: tpu_custom_call.1
= control target key start
LH: loop header
LB: loop body
LE: loop exit
PB: predicated region body
PF: predicated region fallthrough
CT: control target
= control target key end

     0   :  { %s1927_s30 = smov 0   ;;  %s2368_s0 = inlined_call_operand.vmem [shape: f32[256,32], index: 0, kind: input, shape index: {}]   ;;  %s2369_s1 = inlined_call_operand.vmem [shape: f32[256,32], index: 1, kind: input, shape index: {}]   ;;  %s2370_s2 = inlined_call_operand.vmem [shape: f32[256,32], index: 2, kind: input, shape index: {}]   ;;  %s2371_s3 = inlined_call_operand.vmem [shape: f32[256,32], index: 3, kind: input, shape index: {}]   ;;  %s2372_s4 = inlined_call_operand.vmem [shape: f32[32,128], index: 4, kind: input, shape index: {}]   ;;  %s2373_s5 = inlined_call_operand.vmem [shape: f32[32,128], index: 5, kind: input, shape index: {}]   ;;  %s2374_s6 = inlined_call_operand.vmem [shape: f32[32,128], index: 6, kind: input, shape index: {}]   ;;  %s2375_s7 = inlined_call_operand.vmem [shape: f32[1,128], index: 7, kind: input, shape index: {}]   ;;  %s2376_s8 = inlined_call_operand.vmem [shape: f32[256,32], index: 8, kind: output, shape index: {0}]   ;;  %s2377_s9 = inlined_call_operand.vmem [shape: f32[256,32], index: 9, kind: output, shape index: {1}]  }
   0x1 LB: > { %s1541_s10 = sadd.s32 4294967295, %s1873_s30   ;;  %p1545_p0 = scmp.ge.s32.totalorder %s1873_s30, 1  ;;  %s1873_s30 = sphi %s1927_s30, %s20_s30  }
   0x2   : > { %p324_p1 = scmp.lt.s32.totalorder %s1873_s30, 3 }
   0x4   : > { %p325_p2 = pnand %p1545_p0, %p324_p1 }
   0x5   : > { %v452_v0 = vld [vmem:[%s2373_s5] sm:$0xff] (!%p325_p2)  ;;  %v453_v1 = vld [vmem:[%s2373_s5 + $0x8] sm:$0xff] (!%p325_p2)  ;;  %s1546_s17 = sshll.u32 (!%p325_p2), %s1541_s10, 4  ;;  %v454_v5 = vld [vmem:[%s2373_s5 + $0x10] sm:$0xff] (!%p325_p2)  ;;  %vm456_vm0 = vcmask (!%p325_p2), 261120   ;;  %s1875_s28 = smov (!%p325_p2), 96  }
   0x6   : > { %328 = sbr.rel (%p325_p2) target bundleno = 536 (0x218), region = 52  ;;  %v432_v2 = vld [vmem:[%s2372_s4] sm:$0xff] (!%p325_p2)  ;;  %v1765_v3 = vpack.c.bf16 (!%p325_p2), %v453_v1, %v452_v0  ;;  %v433_v4 = vld [vmem:[%s2372_s4 + $0x8] sm:$0xff] (!%p325_p2)  ;;  %v455_v6 = vld [vmem:[%s2373_s5 + $0x18] sm:$0xff] (!%p325_p2)  ;;  %p381_p3 = scmp.lt.s32.totalorder (!%p325_p2), %s1546_s17, 31 }
   0x7   : > { %v1773_v7 = vpack.c.bf16 (!%p325_p2), %v433_v4, %v432_v2  ;;  %v1769_v8 = vpack.c.bf16 (!%p325_p2), %v455_v6, %v454_v5  ;;  %v434_v9 = vld [vmem:[%s2372_s4 + $0x10] sm:$0xff] (!%p325_p2)  ;;  %v435_v10 = vld [vmem:[%s2372_s4 + $0x18] sm:$0xff] (!%p325_p2)  ;;  %v859_v12 = vld [vmem:[%s2374_s6] sm:$0xff] (!%p325_p2)  ;;  %s1876_s29 = smov (!%p325_p2), 32  }
   0x8   : > { %1766 = vmatprep.subr.bf16.mxu1 (!%p325_p2), %v1765_v3  ;;  %v1777_v11 = vpack.c.bf16 (!%p325_p2), %v435_v10, %v434_v9  ;;  %v860_v13 = vld [vmem:[%s2374_s6 + $0x8] sm:$0xff] (!%p325_p2)  ;;  %v861_v15 = vld [vmem:[%s2374_s6 + $0x10] sm:$0xff] (!%p325_p2)  ;;  %v862_v18 = vld [vmem:[%s2374_s6 + $0x18] sm:$0xff] (!%p325_p2) }
   0x9   : > { %1774 = vmatprep.subr.bf16.mxu0 (!%p325_p2), %v1773_v7  ;;  %1768 = vmatpush3.bf16.msra.mxu1 (!%p325_p2), %v1765_v3  ;;  %v1781_v14 = vpack.c.bf16 (!%p325_p2), %v860_v13, %v859_v12  ;;  %v1785_v23 = vpack.c.bf16 (!%p325_p2), %v862_v18, %v861_v15 }
   0xa   : > { %1776 = vmatpush3.bf16.msra.mxu0 (!%p325_p2), %v1773_v7  ;;  %1770 = vmatprep.subr.bf16.mxu1 (!%p325_p2), %v1769_v8 }
   0xb   : > { %1778 = vmatprep.subr.bf16.mxu0 (!%p325_p2), %v1777_v11 }
   0xd   : > { %s2379_s17 = smov (!%p381_p3, %s1546_s17), 31  ;;  %1772 = vmatpush3.bf16.msra.mxu1 %v1769_v8 }
   0xe   : > { %s1965_s12 = sshll.u32 %s2379_s17, 3  ;;  %1780 = vmatpush3.bf16.msra.mxu0 %v1777_v11  ;;  %1789 = vmatprep.subr.bf16.mxu1 %v1773_v7 }
   0xf   : > { %s1971_s15 = scalar_lea.vmem %s2369_s1, %s1965_s12  ;;  %s1977_s19 = scalar_lea.vmem %s2368_s0, %s1965_s12  ;;  %1782 = vmatprep.subr.bf16.mxu0 %v1781_v14 }
  0x10   : > { %v436_v16 = vld [vmem:[%s1971_s15] sm:$0xff]  ;;  %v437_v19 = vld [vmem:[%s1971_s15 + $0x8] sm:$0xff]  ;;  %v438_v21 = vld [vmem:[%s1971_s15 + $0x10] sm:$0xff]  ;;  %s2014_s25 = scalar_lea.vmem %s2371_s3, %s1965_s12  ;;  %s2244_s13 = scalar_lea.vmem %s2370_s2, %s1965_s12 }
  0x11   : > { %v416_v17 = vld [vmem:[%s1977_s19] sm:$0xff]  ;;  %1677 = vmatprep.mubr.msk.f32.mxu1 %vm456_vm0, %v436_v16  ;;  %v417_v20 = vld [vmem:[%s1977_s19 + $0x8] sm:$0xff]  ;;  %v418_v22 = vld [vmem:[%s1977_s19 + $0x10] sm:$0xff]  ;;  %s2258_s16 = scalar_lea.vmem %s2376_s8, %s1965_s12  ;;  %s2284_s17 = scalar_lea.vmem %s2377_s9, %s1965_s12 }
  0x12   : > { %1709 = vmatprep.mubr.msk.f32.mxu0 %vm456_vm0, %v416_v17  ;;  %1678 = vmatmul.mubr.msk.f32.vlgmr.msra.gmra.mrb[0].mxu1 %vm456_vm0, %v437_v19  ;;  %v439_v24 = vld [vmem:[%s1971_s15 + $0x18] sm:$0xff]  ;;  %v440_v26 = vld [vmem:[%s1971_s15 + $0x20] sm:$0xff]  ;;  %v441_v28 = vld [vmem:[%s1971_s15 + $0x28] sm:$0xff] }
  0x13   : > { %1710 = vmatmul.mubr.msk.f32.vlgmr.msra.gmra.mrb[0].mxu0 %vm456_vm0, %v417_v20  ;;  %1680 = vmatprep.mubr.msk.f32.mxu1 %vm456_vm0, %v438_v21  ;;  %v419_v25 = vld [vmem:[%s1977_s19 + $0x18] sm:$0xff]  ;;  %v420_v27 = vld [vmem:[%s1977_s19 + $0x20] sm:$0xff]  ;;  %v421_v29 = vld [vmem:[%s1977_s19 + $0x28] sm:$0xff] }
  0x14   : > { %1784 = vmatpush3.bf16.msra.mxu0 %v1781_v14  ;;  %1712 = vmatprep.mubr.msk.f32.mxu0 %vm456_vm0, %v418_v22  ;;  %v442_v30 = vld [vmem:[%s1971_s15 + $0x30] sm:$0xff]  ;;  %v443_v32 = vld [vmem:[%s1971_s15 + $0x38] sm:$0xff]  ;;  %v444_v34 = vld [vmem:[%s1971_s15 + $0x40] sm:$0xff] }
  0x15   : > { %1791 = vmatpush3.bf16.msra.mxu1 %v1773_v7  ;;  %1786 = vmatprep.subr.bf16.mxu0 %v1785_v23  ;;  %v422_v31 = vld [vmem:[%s1977_s19 + $0x30] sm:$0xff]  ;;  %v423_v33 = vld [vmem:[%s1977_s19 + $0x38] sm:$0xff]  ;;  %v843_v35 = vld [vmem:[%s2014_s25] sm:$0xff] }
  0x16   : > { %1681 = vmatmul.mubr.msk.f32.gmra.mrb[2].mxu1 %vm456_vm0, %v439_v24  ;;  %1790 = vmatprep.subr.bf16.mxu1 %v1777_v11  ;;  %v445_v36 = vld [vmem:[%s1971_s15 + $0x48] sm:$0xff]  ;;  %v446_v38 = vld [vmem:[%s1971_s15 + $0x50] sm:$0xff]  ;;  %v447_v40 = vld [vmem:[%s1971_s15 + $0x58] sm:$0xff] }
  0x17   : > { %1713 = vmatmul.mubr.msk.f32.gmra.mrb[2].mxu0 %vm456_vm0, %v419_v25  ;;  %1683 = vmatprep.mubr.msk.f32.mxu1 %vm456_vm0, %v440_v26  ;;  %v844_v37 = vld [vmem:[%s2014_s25 + $0x8] sm:$0xff]  ;;  %v845_v39 = vld [vmem:[%s2014_s25 + $0x10] sm:$0xff]  ;;  %v846_v41 = vld [vmem:[%s2014_s25 + $0x18] sm:$0xff] }
  0x18   : > { %1715 = vmatprep.mubr.msk.f32.mxu0 %vm456_vm0, %v420_v27  ;;  %1788 = vmatpush3.bf16.msra.mxu0 %v1785_v23  ;;  %v448_v42 = vld [vmem:[%s1971_s15 + $0x60] sm:$0xff]  ;;  %v449_v44 = vld [vmem:[%s1971_s15 + $0x68] sm:$0xff]  ;;  %v450_v46 = vld [vmem:[%s1971_s15 + $0x70] sm:$0xff] }
  0x19   : > { %1792 = vmatpush3.bf16.msra.mxu1 %v1777_v11  ;;  %v847_v43 = vld [vmem:[%s2014_s25 + $0x20] sm:$0xff]  ;;  %v848_v45 = vld [vmem:[%s2014_s25 + $0x28] sm:$0xff]  ;;  %v849_v47 = vld [vmem:[%s2014_s25 + $0x30] sm:$0xff] }
  0x1a   : > { %1684 = vmatmul.mubr.msk.f32.gmra.mrb[4].mxu1 %vm456_vm0, %v441_v28  ;;  %v451_v48 = vld [vmem:[%s1971_s15 + $0x78] sm:$0xff]  ;;  %v424_v50 = vld [vmem:[%s1977_s19 + $0x40] sm:$0xff]  ;;  %v425_v52 = vld [vmem:[%s1977_s19 + $0x48] sm:$0xff] }
  0x1b   : > { %1716 = vmatmul.mubr.msk.f32.gmra.mrb[4].mxu0 %vm456_vm0, %v421_v29  ;;  %1686 = vmatprep.mubr.msk.f32.mxu1 %vm456_vm0, %v442_v30  ;;  %v850_v49 = vld [vmem:[%s2014_s25 + $0x38] sm:$0xff]  ;;  %v851_v51 = vld [vmem:[%s2014_s25 + $0x40] sm:$0xff]  ;;  %v852_v53 = vld [vmem:[%s2014_s25 + $0x48] sm:$0xff] }
  0x1c   : > { %1718 = vmatprep.mubr.msk.f32.mxu0 %vm456_vm0, %v422_v31  ;;  %v426_v54 = vld [vmem:[%s1977_s19 + $0x50] sm:$0xff]  ;;  %v427_v56 = vld [vmem:[%s1977_s19 + $0x58] sm:$0xff]  ;;  %v428_v58 = vld [vmem:[%s1977_s19 + $0x60] sm:$0xff] }
  0x1d   : > { %v853_v55 = vld [vmem:[%s2014_s25 + $0x50] sm:$0xff]  ;;  %v854_v57 = vld [vmem:[%s2014_s25 + $0x58] sm:$0xff]  ;;  %v855_v59 = vld [vmem:[%s2014_s25 + $0x60] sm:$0xff] }
  0x1e   : > { %1687 = vmatmul.mubr.msk.f32.gmra.mrb[6].mxu1 %vm456_vm0, %v443_v32  ;;  %v429_v60 = vld [vmem:[%s1977_s19 + $0x68] sm:$0xff]  ;;  %v430_v62 = vld [vmem:[%s1977_s19 + $0x70] sm:$0xff]  ;;  %v431_v0 = vld [vmem:[%s1977_s19 + $0x78] sm:$0xff] }
  0x1f   : > { %1719 = vmatmul.mubr.msk.f32.gmra.mrb[6].mxu0 %vm456_vm0, %v423_v33  ;;  %1689 = vmatprep.mubr.msk.f32.mxu1 %vm456_vm0, %v444_v34  ;;  %v856_v61 = vld [vmem:[%s2014_s25 + $0x68] sm:$0xff]  ;;  %v857_v63 = vld [vmem:[%s2014_s25 + $0x70] sm:$0xff]  ;;  %v858_v1 = vld [vmem:[%s2014_s25 + $0x78] sm:$0xff] }
  0x20   : > { %1741 = vmatprep.mubr.msk.f32.mxu0 %vm456_vm0, %v843_v35  ;;  %v2090_v11 = vld [vmem:[%s2375_s7] ss:$0 sm:$0xff] }
  0x22   : > { %1690 = vmatmul.mubr.msk.f32.gmra.mrb[8].mxu1 %vm456_vm0, %v445_v36 }
  0x23   : > { %1742 = vmatmul.mubr.msk.f32.vlgmr.msra.gmra.mrb[0].mxu0 %vm456_vm0, %v844_v37  ;;  %1692 = vmatprep.mubr.msk.f32.mxu1 %vm456_vm0, %v446_v38 }
  0x24   : > { %1744 = vmatprep.mubr.msk.f32.mxu0 %vm456_vm0, %v845_v39 }
  0x26   : > { %1693 = vmatmul.mubr.msk.f32.gmra.mrb[10].mxu1 %vm456_vm0, %v447_v40 }
  0x27   : > { %1745 = vmatmul.mubr.msk.f32.gmra.mrb[2].mxu0 %vm456_vm0, %v846_v41  ;;  %1695 = vmatprep.mubr.msk.f32.mxu1 %vm456_vm0, %v448_v42 }
  0x28   : > { %1747 = vmatprep.mubr.msk.f32.mxu0 %vm456_vm0, %v847_v43 }
  0x2a   : > { %1696 = vmatmul.mubr.msk.f32.gmra.mrb[12].mxu1 %vm456_vm0, %v449_v44 }
  0x2b   : > { %1748 = vmatmul.mubr.msk.f32.gmra.mrb[4].mxu0 %vm456_vm0, %v848_v45  ;;  %1698 = vmatprep.mubr.msk.f32.mxu1 %vm456_vm0, %v450_v46 }
  0x2c   : > { %1750 = vmatprep.mubr.msk.f32.mxu0 %vm456_vm0, %v849_v47 }
  0x2e   : > { %1699 = vmatmul.mubr.msk.f32.gmra.mrb[14].mxu1 %vm456_vm0, %v451_v48 }
  0x2f   : > { %1751 = vmatmul.mubr.msk.f32.gmra.mrb[6].mxu0 %vm456_vm0, %v850_v49  ;;  %1721 = vmatprep.mubr.msk.f32.mxu1 %vm456_vm0, %v424_v50 }
  0x30   : > { %1753 = vmatprep.mubr.msk.f32.mxu0 %vm456_vm0, %v851_v51 }
  0x32   : > { %1722 = vmatmul.mubr.msk.f32.vlgmr.msra.gmra.mrb[8].mxu1 %vm456_vm0, %v425_v52 }
  0x33   : > { %1754 = vmatmul.mubr.msk.f32.gmra.mrb[8].mxu0 %vm456_vm0, %v852_v53  ;;  %1724 = vmatprep.mubr.msk.f32.mxu1 %vm456_vm0, %v426_v54 }
  0x34   : > { %1756 = vmatprep.mubr.msk.f32.mxu0 %vm456_vm0, %v853_v55 }
  0x36   : > { %1725 = vmatmul.mubr.msk.f32.gmra.mrb[10].mxu1 %vm456_vm0, %v427_v56 }
  0x37   : > { %1757 = vmatmul.mubr.msk.f32.gmra.mrb[10].mxu0 %vm456_vm0, %v854_v57  ;;  %1727 = vmatprep.mubr.msk.f32.mxu1 %vm456_vm0, %v428_v58 }
  0x38   : > { %1759 = vmatprep.mubr.msk.f32.mxu0 %vm456_vm0, %v855_v59 }
  0x3a   : > { %1728 = vmatmul.mubr.msk.f32.gmra.mrb[12].mxu1 %vm456_vm0, %v429_v60 }
  0x3b   : > { %1760 = vmatmul.mubr.msk.f32.gmra.mrb[12].mxu0 %vm456_vm0, %v856_v61  ;;  %1730 = vmatprep.mubr.msk.f32.mxu1 %vm456_vm0, %v430_v62 }
  0x3c   : > { %1762 = vmatprep.mubr.msk.f32.mxu0 %vm456_vm0, %v857_v63 }
  0x3e   : > { %1731 = vmatmul.mubr.msk.f32.gmra.mrb[14].mxu1 %vm456_vm0, %v431_v0 }
  0x3f   : > { %1763 = vmatmul.mubr.msk.f32.gmra.mrb[14].mxu0 %vm456_vm0, %v858_v1 }
  0xe5   : > { %v1679_v2 = vpop.f32.mrb[0].mxu1 }
  0xe6   : > { %v571_v3 = vpop.f32.mrb[1].mxu1 }
  0xe9   : > { %v1682_v4 = vpop.f32.mrb[2].mxu1 }
  0xea   : > { %v581_v5 = vpop.f32.mrb[3].mxu1 }
  0xed   : > { %v1685_v6 = vpop.f32.mrb[4].mxu1 }
  0xee   : > { %v591_v7 = vpop.f32.mrb[5].mxu1 }
  0xf1   : > { %v1688_v8 = vpop.f32.mrb[6].mxu1 }
  0xf2   : > { %v601_v9 = vpop.f32.mrb[7].mxu1 }
  0xf6   : > { %v1743_v10 = vpop.f32.mrb[0].mxu0 }
  0xf7   : > { %v1793_v12 = vadd.f32 %v1743_v10, %v1679_v2  ;;  %v977_v13 = vpop.f32.mrb[1].mxu0 }
  0xf8   : > { %v1794_v14 = vadd.f32 %v977_v13, %v571_v3 }
  0xf9   : > { %v1080_v15 = vadd.f32 %v1793_v12, %v2090_v11 }
  0xfa   : > { %v1746_v16 = vpop.f32.mrb[2].mxu0  ;;  %v1079_v18 = vadd.f32 %v1794_v14, %v2090_v11 }
  0xfb   : > { %v2093_v17 = vmax.f32 %v1080_v15, 0.0  ;;  %v1795_v19 = vadd.f32 %v1746_v16, %v1682_v4  ;;  %v987_v20 = vpop.f32.mrb[3].mxu0 }
  0xfc   : > { %v1796_v21 = vadd.f32 %v987_v20, %v581_v5  ;;  %v2099_v24 = vmax.f32 %v1079_v18, 0.0 }
  0xfd   : > { %v1082_v22 = vadd.f32 %v1795_v19, %v2090_v11  ;;  %1161 = vrot.lane.b32.xlu0 %v2093_v17, %s1875_s28 }
  0xfe   : > { %v1749_v23 = vpop.f32.mrb[4].mxu0  ;;  %v1081_v26 = vadd.f32 %v1796_v21, %v2090_v11 }
  0xff   : > { %v2101_v25 = vmax.f32 %v1082_v22, 0.0  ;;  %v1797_v27 = vadd.f32 %v1749_v23, %v1685_v6  ;;  %v997_v28 = vpop.f32.mrb[5].mxu0 }
 0x100   : > { %v1798_v29 = vadd.f32 %v997_v28, %v591_v7  ;;  %v2109_v32 = vmax.f32 %v1081_v26, 0.0 }
 0x101   : > { %1159 = vrot.lane.b32.xlu0 %v2099_v24, %s1875_s28  ;;  %1165 = vrot.lane.b32.xlu1 %v2101_v25, %s1875_s28  ;;  %v1084_v33 = vadd.f32 %v1797_v27, %v2090_v11 }
 0x102   : > { %v1083_v30 = vadd.f32 %v1798_v29, %v2090_v11  ;;  %v1752_v31 = vpop.f32.mrb[6].mxu0 }
 0x103   : > { %v1799_v34 = vadd.f32 %v1752_v31, %v1688_v8  ;;  %v1007_v35 = vpop.f32.mrb[7].mxu0  ;;  %v2119_v42 = vmax.f32 %v1084_v33, 0.0 }
 0x104   : > { %v2112_v36 = vmax.f32 %v1083_v30, 0.0  ;;  %v1800_v37 = vadd.f32 %v1007_v35, %v601_v9 }
 0x105   : > { %1163 = vrot.lane.b32.xlu1 %v2109_v32, %s1875_s28  ;;  %v1723_v38 = vpop.f32.mrb[8].mxu1  ;;  %v1086_v43 = vadd.f32 %v1799_v34, %v2090_v11 }
 0x106   : > { %v1085_v39 = vadd.f32 %v1800_v37, %v2090_v11  ;;  %1167 = vrot.lane.b32.xlu0 %v2112_v36, %s1875_s28  ;;  %v1755_v40 = vpop.f32.mrb[8].mxu0  ;;  %v804_v41 = vpop.f32.mrb[9].mxu1 }
 0x107   : > { %v1801_v44 = vadd.f32 %v1755_v40, %v1723_v38  ;;  %v1017_v45 = vpop.f32.mrb[9].mxu0  ;;  %v2129_v52 = vmax.f32 %v1086_v43, 0.0 }
 0x108   : > { %v2122_v46 = vmax.f32 %v1085_v39, 0.0  ;;  %v1802_v47 = vadd.f32 %v1017_v45, %v804_v41 }
 0x109   : > { %1169 = vrot.lane.b32.xlu1 %v2119_v42, %s1875_s28  ;;  %v1726_v48 = vpop.f32.mrb[10].mxu1  ;;  %v1088_v53 = vadd.f32 %v1801_v44, %v2090_v11 }
 0x10a   : > { %v1087_v49 = vadd.f32 %v1802_v47, %v2090_v11  ;;  %1171 = vrot.lane.b32.xlu0 %v2122_v46, %s1875_s28  ;;  %v1758_v50 = vpop.f32.mrb[10].mxu0  ;;  %v814_v51 = vpop.f32.mrb[11].mxu1 }
 0x10b   : > { %v1803_v54 = vadd.f32 %v1758_v50, %v1726_v48  ;;  %v1027_v55 = vpop.f32.mrb[11].mxu0  ;;  %v2139_v62 = vmax.f32 %v1088_v53, 0.0 }
 0x10c   : > { %v2132_v56 = vmax.f32 %v1087_v49, 0.0  ;;  %v1804_v57 = vadd.f32 %v1027_v55, %v814_v51 }
 0x10d   : > { %1173 = vrot.lane.b32.xlu1 %v2129_v52, %s1875_s28  ;;  %v1729_v58 = vpop.f32.mrb[12].mxu1  ;;  %v1090_v63 = vadd.f32 %v1803_v54, %v2090_v11 }
 0x10e   : > { %v1089_v59 = vadd.f32 %v1804_v57, %v2090_v11  ;;  %1175 = vrot.lane.b32.xlu0 %v2132_v56, %s1875_s28  ;;  %v1761_v60 = vpop.f32.mrb[12].mxu0  ;;  %v824_v61 = vpop.f32.mrb[13].mxu1 }
 0x10f   : > { %v1805_v0 = vadd.f32 %v1761_v60, %v1729_v58  ;;  %v1037_v1 = vpop.f32.mrb[13].mxu0  ;;  %v2149_v8 = vmax.f32 %v1090_v63, 0.0 }
 0x110   : > { %v2142_v2 = vmax.f32 %v1089_v59, 0.0  ;;  %v1806_v3 = vadd.f32 %v1037_v1, %v824_v61 }
 0x111   : > { %1177 = vrot.lane.b32.xlu1 %v2139_v62, %s1875_s28  ;;  %v1732_v4 = vpop.f32.mrb[14].mxu1  ;;  %v1092_v9 = vadd.f32 %v1805_v0, %v2090_v11 }
 0x112   : > { %v1091_v5 = vadd.f32 %v1806_v3, %v2090_v11  ;;  %1179 = vrot.lane.b32.xlu0 %v2142_v2, %s1875_s28  ;;  %v1764_v6 = vpop.f32.mrb[14].mxu0  ;;  %v834_v7 = vpop.f32.mrb[15].mxu1 }
 0x113   : > { %v1807_v10 = vadd.f32 %v1764_v6, %v1732_v4  ;;  %v1047_v12 = vpop.f32.mrb[15].mxu0  ;;  %v2159_v16 = vmax.f32 %v1092_v9, 0.0 }
 0x114   : > { %v2152_v13 = vmax.f32 %v1091_v5, 0.0  ;;  %v1808_v14 = vadd.f32 %v1047_v12, %v834_v7  ;;  %v1112_v5 = vld [vmem:[%s2244_s13 + $0x8] sm:$0xff]  ;;  %v1111_v12 = vld [vmem:[%s2244_s13] sm:$0xff] }
 0x115   : > { %1181 = vrot.lane.b32.xlu1 %v2149_v8, %s1875_s28  ;;  %v1094_v18 = vadd.f32 %v1807_v10, %v2090_v11  ;;  %v1128_v6 = vmul.f32 %v1112_v5, %v2093_v17  ;;  %v1114_v10 = vld [vmem:[%s2244_s13 + $0x18] sm:$0xff] }
 0x116   : > { %v1093_v15 = vadd.f32 %v1808_v14, %v2090_v11  ;;  %1183 = vrot.lane.b32.xlu0 %v2152_v13, %s1875_s28 }
 0x117   : > { %v2168_v20 = vmax.f32 %v1094_v18, 0.0 }
 0x118   : > { %v2162_v19 = vmax.f32 %v1093_v15, 0.0  ;;  %v1127_v15 = vmul.f32 %v1111_v12, %v2099_v24 }
 0x119   : > { %1185 = vrot.lane.b32.xlu1 %v2159_v16, %s1875_s28 }
 0x11a   : > { %1187 = vrot.lane.b32.xlu0 %v2162_v19, %s1875_s28 }
 0x11d   : > { %1189 = vrot.lane.b32.xlu1 %v2168_v20, %s1875_s28 }
 0x11e   : > { %1319 = vrot.lane.b32.xlu0 %v2099_v24, %s1876_s29 }
 0x121   : > { %1321 = vrot.lane.b32.xlu1 %v2093_v17, %s1876_s29 }
 0x122   : > { %1323 = vrot.lane.b32.xlu0 %v2109_v32, %s1876_s29 }
 0x125   : > { %1325 = vrot.lane.b32.xlu1 %v2101_v25, %s1876_s29 }
 0x126   : > { %1327 = vrot.lane.b32.xlu0 %v2112_v36, %s1876_s29 }
 0x129   : > { %1329 = vrot.lane.b32.xlu1 %v2119_v42, %s1876_s29 }
 0x12a   : > { %1331 = vrot.lane.b32.xlu0 %v2122_v46, %s1876_s29 }
 0x12d   : > { %1333 = vrot.lane.b32.xlu1 %v2129_v52, %s1876_s29 }
 0x16f   : > { %v1162_v11 = vpop.permute.xlu0 %1161 }
 0x170   : > { %v1208_v21 = vmul.f32 %v1162_v11, %v2093_v17  ;;  %v1130_v17 = vmul.f32 %v1114_v10, %v2101_v25 }
 0x172   : > { %1241 = vrot.lane.b32.xlu1 %v1208_v21, %s1875_s28  ;;  %v1113_v21 = vld [vmem:[%s2244_s13 + $0x10] sm:$0xff] }
 0x173   : > { %v1160_v22 = vpop.permute.xlu0 %1159  ;;  %v1166_v23 = vpop.permute.xlu1 %1165 }
 0x174   : > { %v1207_v26 = vmul.f32 %v1160_v22, %v2099_v24  ;;  %v1210_v27 = vmul.f32 %v1166_v23, %v2101_v25  ;;  %v1115_v24 = vld [vmem:[%s2244_s13 + $0x20] sm:$0xff] }
 0x176   : > { %1245 = vrot.lane.b32.xlu1 %v1210_v27, %s1875_s28  ;;  %1239 = vrot.lane.b32.xlu0 %v1207_v26, %s1875_s28  ;;  %v1129_v26 = vmul.f32 %v1113_v21, %v2109_v32  ;;  %v1116_v27 = vld [vmem:[%s2244_s13 + $0x28] sm:$0xff]  ;;  %v1126_v21 = vld [vmem:[%s2244_s13 + $0x78] sm:$0xff] }
 0x177   : > { %v1164_v28 = vpop.permute.xlu1 %1163 }
 0x178   : > { %v1209_v29 = vmul.f32 %v1164_v28, %v2109_v32  ;;  %v1168_v30 = vpop.permute.xlu0 %1167 }
 0x179   : > { %v1211_v33 = vmul.f32 %v1168_v30, %v2112_v36  ;;  %v1131_v30 = vmul.f32 %v1115_v24, %v2112_v36 }
 0x17a   : > { %1243 = vrot.lane.b32.xlu0 %v1209_v29, %s1875_s28  ;;  %v1132_v29 = vmul.f32 %v1116_v27, %v2119_v42 }
 0x17b   : > { %v1170_v31 = vpop.permute.xlu1 %1169 }
 0x17c   : > { %v1212_v34 = vmul.f32 %v1170_v31, %v2119_v42  ;;  %v1172_v35 = vpop.permute.xlu0 %1171 }
 0x17d   : > { %v1213_v38 = vmul.f32 %v1172_v35, %v2122_v46  ;;  %v1117_v35 = vld [vmem:[%s2244_s13 + $0x30] sm:$0xff] }
 0x17e   : > { %1249 = vrot.lane.b32.xlu1 %v1212_v34, %s1875_s28  ;;  %1247 = vrot.lane.b32.xlu0 %v1211_v33, %s1875_s28  ;;  %v1118_v34 = vld [vmem:[%s2244_s13 + $0x38] sm:$0xff]  ;;  %v1133_v42 = vmul.f32 %v1117_v35, %v2122_v46 }
 0x17f   : > { %v1174_v37 = vpop.permute.xlu1 %1173  ;;  %v1134_v36 = vmul.f32 %v1118_v34, %v2129_v52 }
 0x180   : > { %v1214_v39 = vmul.f32 %v1174_v37, %v2129_v52  ;;  %v1176_v40 = vpop.permute.xlu0 %1175 }
 0x181   : > { %v1215_v43 = vmul.f32 %v1176_v40, %v2132_v56 }
 0x182   : > { %1253 = vrot.lane.b32.xlu1 %v1214_v39, %s1875_s28  ;;  %1251 = vrot.lane.b32.xlu0 %v1213_v38, %s1875_s28 }
 0x183   : > { %v1178_v41 = vpop.permute.xlu1 %1177 }
 0x184   : > { %v1216_v44 = vmul.f32 %v1178_v41, %v2139_v62  ;;  %v1180_v45 = vpop.permute.xlu0 %1179 }
 0x185   : > { %v1217_v48 = vmul.f32 %v1180_v45, %v2142_v2 }
 0x186   : > { %1257 = vrot.lane.b32.xlu1 %v1216_v44, %s1875_s28  ;;  %1255 = vrot.lane.b32.xlu0 %v1215_v43, %s1875_s28  ;;  %v1120_v43 = vld [vmem:[%s2244_s13 + $0x48] sm:$0xff]  ;;  %v1119_v44 = vld [vmem:[%s2244_s13 + $0x40] sm:$0xff] }
 0x187   : > { %v1182_v47 = vpop.permute.xlu1 %1181  ;;  %v1136_v46 = vmul.f32 %v1120_v43, %v2139_v62 }
 0x188   : > { %v1218_v49 = vmul.f32 %v1182_v47, %v2149_v8  ;;  %v1184_v50 = vpop.permute.xlu0 %1183 }
 0x189   : > { %v1219_v53 = vmul.f32 %v1184_v50, %v2152_v13 }
 0x18a   : > { %1261 = vrot.lane.b32.xlu1 %v1218_v49, %s1875_s28  ;;  %1259 = vrot.lane.b32.xlu0 %v1217_v48, %s1875_s28 }
 0x18b   : > { %v1186_v51 = vpop.permute.xlu1 %1185 }
 0x18c   : > { %v1220_v54 = vmul.f32 %v1186_v51, %v2159_v16  ;;  %v1188_v55 = vpop.permute.xlu0 %1187  ;;  %v1135_v51 = vmul.f32 %v1119_v44, %v2132_v56 }
 0x18d   : > { %v1221_v58 = vmul.f32 %v1188_v55, %v2162_v19  ;;  %v1122_v55 = vld [vmem:[%s2244_s13 + $0x58] sm:$0xff] }
 0x18e   : > { %1265 = vrot.lane.b32.xlu1 %v1220_v54, %s1875_s28  ;;  %1263 = vrot.lane.b32.xlu0 %v1219_v53, %s1875_s28 }
 0x18f   : > { %v1190_v57 = vpop.permute.xlu1 %1189 }
 0x190   : > { %v1222_v59 = vmul.f32 %v1190_v57, %v2168_v20  ;;  %v1320_v61 = vpop.permute.xlu0 %1319  ;;  %v1121_v57 = vld [vmem:[%s2244_s13 + $0x50] sm:$0xff] }
 0x192   : > { %1269 = vrot.lane.b32.xlu1 %v1222_v59, %s1875_s28  ;;  %1267 = vrot.lane.b32.xlu0 %v1221_v58, %s1875_s28 }
 0x193   : > { %v1322_v60 = vpop.permute.xlu1 %1321 }
 0x194   : > { %v2236_v0 = vpop.permute.xlu0 %1323 }
 0x196   : > { %1337 = vrot.lane.b32.xlu1 %v2139_v62, %s1876_s29  ;;  %1335 = vrot.lane.b32.xlu0 %v2132_v56, %s1876_s29  ;;  %v1138_v56 = vmul.f32 %v1122_v55, %v2149_v8  ;;  %v1137_v62 = vmul.f32 %v1121_v57, %v2142_v2 }
 0x197   : > { %v1326_v63 = vpop.permute.xlu1 %1325 }
 0x198   : > { %v2246_v3 = vpop.permute.xlu0 %1327 }
 0x19a   : > { %1341 = vrot.lane.b32.xlu1 %v2149_v8, %s1876_s29  ;;  %1339 = vrot.lane.b32.xlu0 %v2142_v2, %s1876_s29 }
 0x19b   : > { %v2238_v1 = vpop.permute.xlu1 %1329 }
 0x19c   : > { %v2252_v7 = vpop.permute.xlu0 %1331 }
 0x19e   : > { %1345 = vrot.lane.b32.xlu1 %v2159_v16, %s1876_s29  ;;  %1343 = vrot.lane.b32.xlu0 %v2152_v13, %s1876_s29 }
 0x19f   : > { %v2248_v4 = vpop.permute.xlu1 %1333 }
 0x1a2   : > { %1349 = vrot.lane.b32.xlu1 %v2168_v20, %s1876_s29  ;;  %1347 = vrot.lane.b32.xlu0 %v2162_v19, %s1876_s29 }
 0x1e4   : > { %v1242_v9 = vpop.permute.xlu1 %1241 }
 0x1e5   : > { %v1288_v14 = vadd.f32 %v1242_v9, %v1128_v6  ;;  %v1124_v6 = vld [vmem:[%s2244_s13 + $0x68] sm:$0xff]  ;;  %v1123_v9 = vld [vmem:[%s2244_s13 + $0x60] sm:$0xff] }
 0x1e7   : > { %1835 = vtanh.f32 %v1288_v14  ;;  %1384 = vst.msk [vmem:[%s2258_s16 + $0x8] sm:$0xff] %vm456_vm0, %v1288_v14 }
 0x1e8   : > { %v1246_v18 = vpop.permute.xlu1 %1245  ;;  %v1240_v11 = vpop.permute.xlu0 %1239 }
 0x1e9   : > { %v1290_v22 = vadd.f32 %v1246_v18, %v1130_v17  ;;  %v1287_v23 = vadd.f32 %v1240_v11, %v1127_v15  ;;  %v1140_v17 = vmul.f32 %v1124_v6, %v2159_v16  ;;  %v1139_v15 = vmul.f32 %v1123_v9, %v2152_v13 }
 0x1eb   : > { %1837 = vtanh.f32 %v1290_v22  ;;  %1386 = vst.msk [vmem:[%s2258_s16 + $0x18] sm:$0xff] %vm456_vm0, %v1290_v22  ;;  %1383 = vst.msk [vmem:[%s2258_s16] sm:$0xff] %vm456_vm0, %v1287_v23 }
 0x1ec   : > { %1839 = vtanh.f32 %v1287_v23  ;;  %v1244_v25 = vpop.permute.xlu0 %1243 }
 0x1ed   : > { %v1289_v28 = vadd.f32 %v1244_v25, %v1129_v26  ;;  %v1142_v25 = vmul.f32 %v1126_v21, %v2168_v20 }
 0x1ef   : > { %1841 = vtanh.f32 %v1289_v28  ;;  %1385 = vst.msk [vmem:[%s2258_s16 + $0x10] sm:$0xff] %vm456_vm0, %v1289_v28 }
 0x1f0   : > { %v1250_v31 = vpop.permute.xlu1 %1249  ;;  %v1248_v33 = vpop.permute.xlu0 %1247 }
 0x1f1   : > { %v1836_v32 = vpop.eup %1835  ;;  %v1292_v37 = vadd.f32 %v1250_v31, %v1132_v29  ;;  %v1291_v38 = vadd.f32 %v1248_v33, %v1131_v30 }
 0x1f2   : > { %v1368_v39 = vmul.f32 %v1836_v32, %v1322_v60 }
 0x1f3   : > { %1843 = vtanh.f32 %v1292_v37  ;;  %1388 = vst.msk [vmem:[%s2258_s16 + $0x28] sm:$0xff] %vm456_vm0, %v1292_v37  ;;  %1387 = vst.msk [vmem:[%s2258_s16 + $0x20] sm:$0xff] %vm456_vm0, %v1291_v38 }
 0x1f4   : > { %1400 = vst.msk [vmem:[%s2284_s17 + $0x8] sm:$0xff] %vm456_vm0, %v1368_v39  ;;  %1845 = vtanh.f32 %v1291_v38  ;;  %v1254_v40 = vpop.permute.xlu1 %1253  ;;  %v1252_v41 = vpop.permute.xlu0 %1251 }
 0x1f5   : > { %v1838_v45 = vpop.eup %1837  ;;  %v1294_v47 = vadd.f32 %v1254_v40, %v1134_v36  ;;  %v1293_v48 = vadd.f32 %v1252_v41, %v1133_v42 }
 0x1f6   : > { %v1840_v49 = vpop.eup %1839  ;;  %v1370_v50 = vmul.f32 %v1838_v45, %v1326_v63 }
 0x1f7   : > { %v1367_v52 = vmul.f32 %v1840_v49, %v1320_v61  ;;  %1847 = vtanh.f32 %v1294_v47  ;;  %1390 = vst.msk [vmem:[%s2258_s16 + $0x38] sm:$0xff] %vm456_vm0, %v1294_v47  ;;  %1389 = vst.msk [vmem:[%s2258_s16 + $0x30] sm:$0xff] %vm456_vm0, %v1293_v48 }
 0x1f8   : > { %1402 = vst.msk [vmem:[%s2284_s17 + $0x18] sm:$0xff] %vm456_vm0, %v1370_v50  ;;  %1849 = vtanh.f32 %v1293_v48  ;;  %v1258_v53 = vpop.permute.xlu1 %1257  ;;  %v1256_v54 = vpop.permute.xlu0 %1255 }
 0x1f9   : > { %v1842_v58 = vpop.eup %1841  ;;  %1399 = vst.msk [vmem:[%s2284_s17] sm:$0xff] %vm456_vm0, %v1367_v52  ;;  %v1296_v59 = vadd.f32 %v1258_v53, %v1136_v46  ;;  %v1295_v60 = vadd.f32 %v1256_v54, %v1135_v51 }
 0x1fa   : > { %v1369_v61 = vmul.f32 %v1842_v58, %v2236_v0 }
 0x1fb   : > { %1392 = vst.msk [vmem:[%s2258_s16 + $0x48] sm:$0xff] %vm456_vm0, %v1296_v59  ;;  %1391 = vst.msk [vmem:[%s2258_s16 + $0x40] sm:$0xff] %vm456_vm0, %v1295_v60  ;;  %1851 = vtanh.f32 %v1296_v59 }
 0x1fc   : > { %1401 = vst.msk [vmem:[%s2284_s17 + $0x10] sm:$0xff] %vm456_vm0, %v1369_v61  ;;  %v1262_v63 = vpop.permute.xlu1 %1261  ;;  %v1260_v5 = vpop.permute.xlu0 %1259  ;;  %1853 = vtanh.f32 %v1295_v60 }
 0x1fd   : > { %v1844_v10 = vpop.eup %1843  ;;  %v1298_v0 = vadd.f32 %v1262_v63, %v1138_v56  ;;  %v1297_v12 = vadd.f32 %v1260_v5, %v1137_v62 }
 0x1fe   : > { %v1846_v14 = vpop.eup %1845  ;;  %v1372_v8 = vmul.f32 %v1844_v10, %v2238_v1  ;;  %v1125_v1 = vld [vmem:[%s2244_s13 + $0x70] sm:$0xff] }
 0x1ff   : > { %v1371_v2 = vmul.f32 %v1846_v14, %v2246_v3  ;;  %1394 = vst.msk [vmem:[%s2258_s16 + $0x58] sm:$0xff] %vm456_vm0, %v1298_v0  ;;  %1393 = vst.msk [vmem:[%s2258_s16 + $0x50] sm:$0xff] %vm456_vm0, %v1297_v12  ;;  %1855 = vtanh.f32 %v1298_v0  ;;  %v1141_v27 = vmul.f32 %v1125_v1, %v2162_v19 }
 0x200   : > { %1404 = vst.msk [vmem:[%s2284_s17 + $0x28] sm:$0xff] %vm456_vm0, %v1372_v8  ;;  %v1266_v18 = vpop.permute.xlu1 %1265  ;;  %v1264_v11 = vpop.permute.xlu0 %1263  ;;  %1857 = vtanh.f32 %v1297_v12 }
 0x201   : > { %v1848_v22 = vpop.eup %1847  ;;  %1403 = vst.msk [vmem:[%s2284_s17 + $0x20] sm:$0xff] %vm456_vm0, %v1371_v2  ;;  %v1300_v3 = vadd.f32 %v1266_v18, %v1140_v17  ;;  %v1299_v23 = vadd.f32 %v1264_v11, %v1139_v15 }
 0x202   : > { %v1850_v26 = vpop.eup %1849  ;;  %v1374_v16 = vmul.f32 %v1848_v22, %v2248_v4 }
 0x203   : > { %v1373_v13 = vmul.f32 %v1850_v26, %v2252_v7  ;;  %1396 = vst.msk [vmem:[%s2258_s16 + $0x68] sm:$0xff] %vm456_vm0, %v1300_v3  ;;  %1395 = vst.msk [vmem:[%s2258_s16 + $0x60] sm:$0xff] %vm456_vm0, %v1299_v23  ;;  %1859 = vtanh.f32 %v1300_v3 }
 0x204   : > { %1406 = vst.msk [vmem:[%s2284_s17 + $0x38] sm:$0xff] %vm456_vm0, %v1374_v16  ;;  %v1270_v24 = vpop.permute.xlu1 %1269  ;;  %v1268_v28 = vpop.permute.xlu0 %1267  ;;  %1861 = vtanh.f32 %v1299_v23 }
 0x205   : > { %1405 = vst.msk [vmem:[%s2284_s17 + $0x30] sm:$0xff] %vm456_vm0, %v1373_v13  ;;  %v1302_v4 = vadd.f32 %v1270_v24, %v1142_v25  ;;  %v1301_v29 = vadd.f32 %v1268_v28, %v1141_v27  ;;  %v1852_v7 = vpop.eup %1851 }
 0x206   : > { %v1854_v20 = vpop.eup %1853 }
 0x207   : > { %1398 = vst.msk [vmem:[%s2258_s16 + $0x78] sm:$0xff] %vm456_vm0, %v1302_v4  ;;  %1397 = vst.msk [vmem:[%s2258_s16 + $0x70] sm:$0xff] %vm456_vm0, %v1301_v29  ;;  %1863 = vtanh.f32 %v1302_v4 }
 0x208   : > { %v1338_v19 = vpop.permute.xlu1 %1337  ;;  %v1336_v30 = vpop.permute.xlu0 %1335  ;;  %1865 = vtanh.f32 %v1301_v29 }
 0x209   : > { %v1376_v31 = vmul.f32 %v1852_v7, %v1338_v19  ;;  %v1375_v33 = vmul.f32 %v1854_v20, %v1336_v30  ;;  %v1856_v34 = vpop.eup %1855 }
 0x20a   : > { %v1858_v35 = vpop.eup %1857 }
 0x20b   : > { %1408 = vst.msk [vmem:[%s2284_s17 + $0x48] sm:$0xff] %vm456_vm0, %v1376_v31  ;;  %1407 = vst.msk [vmem:[%s2284_s17 + $0x40] sm:$0xff] %vm456_vm0, %v1375_v33 }
 0x20c   : > { %v1342_v32 = vpop.permute.xlu1 %1341  ;;  %v1340_v37 = vpop.permute.xlu0 %1339 }
 0x20d   : > { %v1378_v38 = vmul.f32 %v1856_v34, %v1342_v32  ;;  %v1377_v39 = vmul.f32 %v1858_v35, %v1340_v37  ;;  %v1860_v36 = vpop.eup %1859 }
 0x20e   : > { %v1862_v42 = vpop.eup %1861 }
 0x20f   : > { %1410 = vst.msk [vmem:[%s2284_s17 + $0x58] sm:$0xff] %vm456_vm0, %v1378_v38  ;;  %1409 = vst.msk [vmem:[%s2284_s17 + $0x50] sm:$0xff] %vm456_vm0, %v1377_v39 }
 0x210   : > { %v1346_v40 = vpop.permute.xlu1 %1345  ;;  %v1344_v41 = vpop.permute.xlu0 %1343 }
 0x211   : > { %v1380_v43 = vmul.f32 %v1860_v36, %v1346_v40  ;;  %v1379_v44 = vmul.f32 %v1862_v42, %v1344_v41  ;;  %v1864_v45 = vpop.eup %1863 }
 0x212   : > { %v1866_v47 = vpop.eup %1865 }
 0x213   : > { %1412 = vst.msk [vmem:[%s2284_s17 + $0x68] sm:$0xff] %vm456_vm0, %v1380_v43  ;;  %1411 = vst.msk [vmem:[%s2284_s17 + $0x60] sm:$0xff] %vm456_vm0, %v1379_v44 }
 0x214   : > { %v1350_v48 = vpop.permute.xlu1 %1349  ;;  %v1348_v49 = vpop.permute.xlu0 %1347 }
 0x215   : > { %v1382_v50 = vmul.f32 %v1864_v45, %v1350_v48  ;;  %v1381_v52 = vmul.f32 %v1866_v47, %v1348_v49 }
 0x217   : > { %1414 = vst.msk [vmem:[%s2284_s17 + $0x78] sm:$0xff] %vm456_vm0, %v1382_v50  ;;  %1413 = vst.msk [vmem:[%s2284_s17 + $0x70] sm:$0xff] %vm456_vm0, %v1381_v52 }
 0x218 PF: > { %s20_s30 = sadd.s32 1, %s1873_s30  }
 0x219   : > { %p17_p4 = scmp.ge.s32.totalorder %s20_s30, 4  }
 0x21b   :  { %19 = sbr.rel (!%p17_p4) target bundleno = 1 (0x1), region = 103 }

</bundles_post_ra>
